<compile_context>
chip_gen: v7x
topology: tpu7x:2x2x1
jax: 0.10.0
libtpu: 0.0.40
codegen_flags: <defaults>
</compile_context>

<pallas_src>
import jax
import jax.numpy as jnp
from jax.experimental import pallas as pl
from jax.experimental.pallas import tpu as pltpu

# Logical synthetic model widths (the VAE spec injects encoder/decoder modules;
# these are the sizes of the synthetic MLPs).
HID = 32          # encoder/decoder hidden width
LAT = 8           # number of latents (encoder outputs 2*LAT)

# Lane-padded widths used inside the kernels (multiples of 128 lanes).
HID_P = 128
LAT_P = 128

# Double-buffered streamed-data budget per call used for tile selection.
_DATA_BUDGET = 16 << 20


def _pick_tile(total, max_cols):
    """Largest multiple of 128 that divides `total` and is <= max_cols (>=128)."""
    max_cols = max(128, (int(max_cols) // 128) * 128)
    best, t, limit = 128, 128, min(total, max_cols)
    while t <= limit:
        if total % t == 0:
            best = t
        t += 128
    return best


def _vmem_limit(nbytes):
    """Footprint-derived scoped-VMEM limit with headroom, clamped per-generation-safe."""
    return int(min(max(nbytes * 3 // 2 + (1 << 20), 16 << 20), 48 << 20))


@jax.jit
def vae_forward(x_nchw, params, eps):
    """Flatten NCHW, pack/pad params, run the two fused Pallas calls, reshape back."""
    B, C, Hs, Ws = x_nchw.shape
    D = C * Hs * Ws
    assert D % 128 == 0, "flattened image dim must be lane aligned"
    assert HID < HID_P and LAT <= LAT_P

    f32, bf16 = jnp.float32, jnp.bfloat16
    B_P = max(8, ((B + 7) // 8) * 8)          # pad batch to >= 8 sublanes

    # ---------------- small-parameter slab layout (single f32 DMA) ----------------
    R_B1, R_B2MU, R_B2LV, R_BD1 = 0, 1, 2, 3  # one bias per row in rows 0..7
    R_EPS = 8                                 # eps occupies B_P rows
    R_W2MU = R_EPS + B_P
    R_W2LV = R_W2MU + HID_P
    R_WD1 = R_W2LV + HID_P
    SLAB_ROWS = R_WD1 + LAT_P                 # multiple of 8
    slab_bytes = SLAB_ROWS * 128 * 4

    # ---------------- tiling: largest dividing 128-multiples within budget --------
    TK = _pick_tile(D, _DATA_BUDGET // (2 * (B_P * 2 + HID_P * 2)))   # encoder K tile
    NT = _pick_tile(D, _DATA_BUDGET // (2 * (HID_P * 2 + B_P * 4)))   # decoder col tile
    n_k = D // TK
    n_t = D // NT

    enc_bytes = (slab_bytes + 2 * (B_P * TK * 2 + TK * HID_P * 2)
                 + 2 * B_P * HID_P * 2 + B_P * HID_P * 4)
    dec_bytes = 2 * B_P * HID_P * 2 + 2 * (HID_P * NT * 2 + B_P * NT * 4)

    # ---------------- inputs / weights: bf16, zero-padded, lane-dense -------------
    x_flat = x_nchw.reshape(B, D)                            # == torch .view(B,-1)
    x_pad = jnp.zeros((B_P, D), bf16).at[:B].set(x_flat.astype(bf16))

    w1_p = jnp.zeros((D, HID_P), bf16).at[:, :HID].set(params["w1"].astype(bf16))
    wd2_p = jnp.zeros((HID_P, D), bf16).at[:HID, :].set(params["wd2"].astype(bf16))
    # Fold bd2 into the last row of wd2: the encoder forces hd[:, HID_P-1] == 1.
    wd2_p = wd2_p.at[HID_P - 1, :].set(params["bd2"][0].astype(bf16))

    slab = jnp.zeros((SLAB_ROWS, 128), f32)
    slab = slab.at[R_B1, :HID].set(params["b1"][0])
    slab = slab.at[R_B2MU, :LAT].set(params["b2"][0, :LAT])   # pre-split w2/b2
    slab = slab.at[R_B2LV, :LAT].set(params["b2"][0, LAT:])
    slab = slab.at[R_BD1, :HID].set(params["bd1"][0])
    slab = slab.at[R_BD1, HID_P - 1].set(1.0)   # constant-1 hidden unit -> carries bd2
    slab = slab.at[R_EPS:R_EPS + B, :LAT].set(eps.astype(f32))
    slab = slab.at[R_W2MU:R_W2MU + HID, :LAT].set(params["w2"][:, :LAT])
    slab = slab.at[R_W2LV:R_W2LV + HID, :LAT].set(params["w2"][:, LAT:])
    slab = slab.at[R_WD1:R_WD1 + LAT, :HID].set(params["wd1"])
    # Note: wd1 column HID_P-1 stays zero, so hd[:, HID_P-1] = relu(0 + 1) = 1.

    # ---------------- call 1: encoder + reparameterize + decoder hidden -----------
    def enc_kernel(x_ref, w1_ref, slab_ref, hd_ref, acc_ref):
        k = pl.program_id(0)

        @pl.when(k == 0)
        def _():
            acc_ref[...] = jnp.zeros_like(acc_ref)

        # bf16 x bf16 -> f32 accumulate (native MXU path, no upcast copies).
        acc_ref[...] += jnp.dot(x_ref[...], w1_ref[...],
                                preferred_element_type=jnp.float32)

        @pl.when(k == pl.num_programs(0) - 1)
        def _():
            b1 = slab_ref[R_B1:R_B1 + 1, :]                   # [1, 128]
            b2_mu = slab_ref[R_B2MU:R_B2MU + 1, :]
            b2_lv = slab_ref[R_B2LV:R_B2LV + 1, :]
            bd1 = slab_ref[R_BD1:R_BD1 + 1, :]
            eps_v = slab_ref[R_EPS:R_EPS + B_P, :]            # [B_P, 128]
            w2_mu = slab_ref[R_W2MU:R_W2MU + HID_P, :]        # [128, 128]
            w2_lv = slab_ref[R_W2LV:R_W2LV + HID_P, :]
            wd1 = slab_ref[R_WD1:R_WD1 + LAT_P, :]

            h = jnp.maximum(acc_ref[...] + b1, 0.0)
            mu = jnp.dot(h, w2_mu, preferred_element_type=jnp.float32) + b2_mu
            lv = jnp.dot(h, w2_lv, preferred_element_type=jnp.float32) + b2_lv
            # Reparameterize (training semantics). Padded latent lanes: lv=0, eps=0.
            z = mu + jnp.exp(0.5 * lv) * eps_v
            hd = jnp.maximum(
                jnp.dot(z, wd1, preferred_element_type=jnp.float32) + bd1, 0.0)
            hd_ref[...] = hd.astype(hd_ref.dtype)             # bf16 LHS for decoder

    enc_cost = pl.CostEstimate(
        flops=2 * B_P * (D * HID_P + 3 * HID_P * LAT_P),
        transcendentals=B_P * LAT_P,
        bytes_accessed=B_P * D * 2 + D * HID_P * 2 + slab_bytes + B_P * HID_P * 2,
    )

    hd = pl.pallas_call(
        enc_kernel,
        out_shape=jax.ShapeDtypeStruct((B_P, HID_P), bf16),
        grid=(n_k,),
        in_specs=[
            pl.BlockSpec((B_P, TK), lambda k: (0, k)),          # x K-tile (bf16)
            pl.BlockSpec((TK, HID_P), lambda k: (k, 0)),        # w1 K-tile (bf16)
            pl.BlockSpec((SLAB_ROWS, 128), lambda k: (0, 0)),   # param slab (resident)
        ],
        out_specs=pl.BlockSpec((B_P, HID_P), lambda k: (0, 0)), # resident output
        scratch_shapes=[pltpu.VMEM((B_P, HID_P), f32)],         # f32 accumulator
        compiler_params=pltpu.CompilerParams(
            dimension_semantics=("arbitrary",),                 # reduction axis
            vmem_limit_bytes=_vmem_limit(enc_bytes),
        ),
        cost_estimate=enc_cost,
    )(x_pad, w1_p, slab)

    # ---------------- call 2: decoder output matmul (column-tiled, parallel) ------
    def dec_kernel(hd_ref, wd2_ref, out_ref):
        # Last row of wd2 is bd2 (bias folded via the constant-1 hd lane).
        out_ref[...] = jnp.dot(hd_ref[...], wd2_ref[...],
                               preferred_element_type=jnp.float32)

    dec_cost = pl.CostEstimate(
        flops=2 * B_P * HID_P * D,
        transcendentals=0,
        bytes_accessed=B_P * HID_P * 2 + HID_P * D * 2 + B_P * D * 4,
    )

    out_pad = pl.pallas_call(
        dec_kernel,
        out_shape=jax.ShapeDtypeStruct((B_P, D), f32),
        grid=(n_t,),
        in_specs=[
            pl.BlockSpec((B_P, HID_P), lambda j: (0, 0)),       # hd (tiny, resident)
            pl.BlockSpec((HID_P, NT), lambda j: (0, j)),        # wd2 column tile
        ],
        out_specs=pl.BlockSpec((B_P, NT), lambda j: (0, j)),
        compiler_params=pltpu.CompilerParams(
            dimension_semantics=("parallel",),   # megacore-splits cleanly on v7x
            vmem_limit_bytes=_vmem_limit(dec_bytes),
        ),
        cost_estimate=dec_cost,
    )(hd, wd2_p)

    return out_pad[:B].reshape(B, C, Hs, Ws)


def init_params(key, D, hid, lat):
    """Deterministic synthetic parameter init (no checkpoint load)."""
    ks = jax.random.split(key, 4)
    scale = 0.02
    return {
        "w1":  scale * jax.random.normal(ks[0], (D, hid), jnp.float32),
        "b1":  jnp.zeros((1, hid), jnp.float32),
        "w2":  scale * jax.random.normal(ks[1], (hid, 2 * lat), jnp.float32),
        "b2":  jnp.zeros((1, 2 * lat), jnp.float32),
        "wd1": scale * jax.random.normal(ks[2], (lat, hid), jnp.float32),
        "bd1": jnp.zeros((1, hid), jnp.float32),
        "wd2": scale * jax.random.normal(ks[3], (hid, D), jnp.float32),
        "bd2": jnp.zeros((1, D), jnp.float32),
    }


def vae_forward_ref(x_nchw, params, eps):
    """Pure-JAX f32 reference; quantizes the same tensors to bf16 as the kernel
    (x, w1, hd, wd2, bd2) so the comparison isolates kernel bugs, not dtype choice."""
    B = x_nchw.shape[0]
    q = lambda a: a.astype(jnp.bfloat16).astype(jnp.float32)
    hi = jax.lax.Precision.HIGHEST
    x = q(x_nchw.reshape(B, -1).astype(jnp.float32))
    h = jnp.maximum(jnp.dot(x, q(params["w1"]), precision=hi) + params["b1"], 0.0)
    enc = jnp.dot(h, params["w2"], precision=hi) + params["b2"]
    lat = enc.shape[1] // 2
    mu, lv = enc[:, :lat], enc[:, lat:]
    z = mu + jnp.exp(0.5 * lv) * eps
    hd = jnp.maximum(jnp.dot(z, params["wd1"], precision=hi) + params["bd1"], 0.0)
    out = jnp.dot(q(hd), q(params["wd2"]), precision=hi) + q(params["bd2"])
    return out.reshape(x_nchw.shape)


if __name__ == "__main__":
    # Small shapes consistent with the module: batch=2, channels=4, 16x16 images.
    B, C, H, W = 2, 4, 16, 16
    D = C * H * W          # 1024

    key = jax.random.PRNGKey(0)
    k_x, k_eps, k_p = jax.random.split(key, 3)

    x = jax.random.normal(k_x, (B, C, H, W), jnp.float32)     # NCHW input
    eps = jax.random.normal(k_eps, (B, LAT), jnp.float32)     # reparameterization noise
    params = init_params(k_p, D, HID, LAT)

    # TODO(synk): eval-mode (self.training == False) would return decode(mu);
    # this kernel implements the training-mode reparameterisation used by forward().

    out = vae_forward(x, params, eps)
    out = jax.block_until_ready(out)

    ref = vae_forward_ref(x, params, eps)
    assert out.shape == (B, C, H, W)
    err = float(jnp.max(jnp.abs(out - ref)))
    assert jnp.allclose(out, ref, atol=3e-4, rtol=3e-4), err

    print("KERNEL_OK")
</pallas_src>

<mosaic_0001>
module attributes {stable_mosaic.version = 11 : i64} {
  func.func @enc_kernel(%arg0: i32, %arg1: memref<8x1024xbf16, #tpu.memory_space<vmem>>, %arg2: memref<1024x128xbf16, #tpu.memory_space<vmem>>, %arg3: memref<400x128xf32, #tpu.memory_space<vmem>>, %arg4: memref<8x128xbf16, #tpu.memory_space<vmem>>, %arg5: memref<8x128xf32, #tpu.memory_space<vmem>>) attributes {dimension_semantics = [#tpu.dimension_semantics<arbitrary>], iteration_bounds = array<i64: 1>, scalar_prefetch = 0 : i64, scratch_operands = 1 : i64, tpu.core_type = #tpu.core_type<tc>, window_params = [{transform_indices = @transform_0, window_bounds = array<i64: 8, 1024>}, {transform_indices = @transform_1, window_bounds = array<i64: 1024, 128>}, {pipeline_mode = #tpu.pipeline_mode<synchronous>, transform_indices = @transform_2, window_bounds = array<i64: 400, 128>}, {pipeline_mode = #tpu.pipeline_mode<synchronous>, transform_indices = @transform_3, window_bounds = array<i64: 8, 128>}]} {
    %c0_i32 = arith.constant 0 : i32
    %0 = arith.cmpi eq, %arg0, %c0_i32 : i32
    %1 = arith.extui %0 : i1 to i32
    %c0_i32_0 = arith.constant 0 : i32
    %2 = arith.cmpi ne, %1, %c0_i32_0 : i32
    scf.if %2 {
      %cst_10 = arith.constant 0.000000e+00 : f32
      %12 = vector.broadcast %cst_10 : f32 to vector<8x128xf32>
      %c0_11 = arith.constant 0 : index
      %c0_12 = arith.constant 0 : index
      %13 = vector.load %arg5[%c0_11, %c0_12] : memref<8x128xf32, #tpu.memory_space<vmem>>, vector<8x128xf32>
      tpu.vector_store %arg5[%c0_11, %c0_12], %12 {strides = array<i32>} : memref<8x128xf32, #tpu.memory_space<vmem>>, vector<8x128xf32>,
    } else {
    }
    %c0 = arith.constant 0 : index
    %c0_1 = arith.constant 0 : index
    %3 = vector.load %arg5[%c0, %c0_1] : memref<8x128xf32, #tpu.memory_space<vmem>>, vector<8x128xf32>
    %c0_2 = arith.constant 0 : index
    %c0_3 = arith.constant 0 : index
    %4 = vector.load %arg1[%c0_2, %c0_3] : memref<8x1024xbf16, #tpu.memory_space<vmem>>, vector<8x1024xbf16>
    %c0_4 = arith.constant 0 : index
    %c0_5 = arith.constant 0 : index
    %5 = vector.load %arg2[%c0_4, %c0_5] : memref<1024x128xbf16, #tpu.memory_space<vmem>>, vector<1024x128xbf16>
    %cst = arith.constant dense<0.000000e+00> : vector<8x128xf32>
    %6 = tpu.matmul %4, %5, %cst {dimension_numbers = #tpu.dot_dimension_numbers<[1], [0], [0], [1], [0, 0, 1, 1], [], []>} : vector<8x1024xbf16>, vector<1024x128xbf16>, vector<8x128xf32> -> vector<8x128xf32>
    %7 = arith.addf %3, %6 : vector<8x128xf32>
    %c0_6 = arith.constant 0 : index
    %c0_7 = arith.constant 0 : index
    %8 = vector.load %arg5[%c0_6, %c0_7] : memref<8x128xf32, #tpu.memory_space<vmem>>, vector<8x128xf32>
    tpu.vector_store %arg5[%c0_6, %c0_7], %7 {strides = array<i32>} : memref<8x128xf32, #tpu.memory_space<vmem>>, vector<8x128xf32>,
    %c0_i32_8 = arith.constant 0 : i32
    %9 = arith.cmpi eq, %arg0, %c0_i32_8 : i32
    %10 = arith.extui %9 : i1 to i32
    %c0_i32_9 = arith.constant 0 : i32
    %11 = arith.cmpi ne, %10, %c0_i32_9 : i32
    scf.if %11 {
      %c0_10 = arith.constant 0 : index
      %c0_11 = arith.constant 0 : index
      %12 = vector.load %arg3[%c0_10, %c0_11] : memref<400x128xf32, #tpu.memory_space<vmem>>, vector<1x128xf32>
      %c1 = arith.constant 1 : index
      %c0_12 = arith.constant 0 : index
      %13 = vector.load %arg3[%c1, %c0_12] : memref<400x128xf32, #tpu.memory_space<vmem>>, vector<1x128xf32>
      %c2 = arith.constant 2 : index
      %c0_13 = arith.constant 0 : index
      %14 = vector.load %arg3[%c2, %c0_13] : memref<400x128xf32, #tpu.memory_space<vmem>>, vector<1x128xf32>
      %c3 = arith.constant 3 : index
      %c0_14 = arith.constant 0 : index
      %15 = vector.load %arg3[%c3, %c0_14] : memref<400x128xf32, #tpu.memory_space<vmem>>, vector<1x128xf32>
      %c8 = arith.constant 8 : index
      %c0_15 = arith.constant 0 : index
      %16 = vector.load %arg3[%c8, %c0_15] : memref<400x128xf32, #tpu.memory_space<vmem>>, vector<8x128xf32>
      %c16 = arith.constant 16 : index
      %c0_16 = arith.constant 0 : index
      %17 = vector.load %arg3[%c16, %c0_16] : memref<400x128xf32, #tpu.memory_space<vmem>>, vector<128x128xf32>
      %c144 = arith.constant 144 : index
      %c0_17 = arith.constant 0 : index
      %18 = vector.load %arg3[%c144, %c0_17] : memref<400x128xf32, #tpu.memory_space<vmem>>, vector<128x128xf32>
      %c272 = arith.constant 272 : index
      %c0_18 = arith.constant 0 : index
      %19 = vector.load %arg3[%c272, %c0_18] : memref<400x128xf32, #tpu.memory_space<vmem>>, vector<128x128xf32>
      %c0_19 = arith.constant 0 : index
      %c0_20 = arith.constant 0 : index
      %20 = vector.load %arg5[%c0_19, %c0_20] : memref<8x128xf32, #tpu.memory_space<vmem>>, vector<8x128xf32>
      %21 = vector.broadcast %12 : vector<1x128xf32> to vector<8x128xf32>
      %22 = arith.addf %20, %21 : vector<8x128xf32>
      %cst_21 = arith.constant 0.000000e+00 : f32
      %23 = vector.broadcast %cst_21 : f32 to vector<8x128xf32>
      %24 = arith.maximumf %22, %23 : vector<8x128xf32>
      %cst_22 = arith.constant dense<0.000000e+00> : vector<8x128xf32>
      %25 = tpu.matmul %24, %17, %cst_22 {dimension_numbers = #tpu.dot_dimension_numbers<[1], [0], [0], [1], [0, 0, 1, 1], [], []>} : vector<8x128xf32>, vector<128x128xf32>, vector<8x128xf32> -> vector<8x128xf32>
      %26 = vector.broadcast %13 : vector<1x128xf32> to vector<8x128xf32>
      %27 = arith.addf %25, %26 : vector<8x128xf32>
      %cst_23 = arith.constant dense<0.000000e+00> : vector<8x128xf32>
      %28 = tpu.matmul %24, %18, %cst_23 {dimension_numbers = #tpu.dot_dimension_numbers<[1], [0], [0], [1], [0, 0, 1, 1], [], []>} : vector<8x128xf32>, vector<128x128xf32>, vector<8x128xf32> -> vector<8x128xf32>
      %29 = vector.broadcast %14 : vector<1x128xf32> to vector<8x128xf32>
      %30 = arith.addf %28, %29 : vector<8x128xf32>
      %cst_24 = arith.constant 5.000000e-01 : f32
      %31 = vector.broadcast %cst_24 : f32 to vector<8x128xf32>
      %32 = arith.mulf %31, %30 : vector<8x128xf32>
      %33 = math.exp %32 : vector<8x128xf32>
      %34 = arith.mulf %33, %16 : vector<8x128xf32>
      %35 = arith.addf %27, %34 : vector<8x128xf32>
      %cst_25 = arith.constant dense<0.000000e+00> : vector<8x128xf32>
      %36 = tpu.matmul %35, %19, %cst_25 {dimension_numbers = #tpu.dot_dimension_numbers<[1], [0], [0], [1], [0, 0, 1, 1], [], []>} : vector<8x128xf32>, vector<128x128xf32>, vector<8x128xf32> -> vector<8x128xf32>
      %37 = vector.broadcast %15 : vector<1x128xf32> to vector<8x128xf32>
      %38 = arith.addf %36, %37 : vector<8x128xf32>
      %cst_26 = arith.constant 0.000000e+00 : f32
      %39 = vector.broadcast %cst_26 : f32 to vector<8x128xf32>
      %40 = arith.maximumf %38, %39 : vector<8x128xf32>
      %41 = arith.truncf %40 : vector<8x128xf32> to vector<8x128xbf16>
      %c0_27 = arith.constant 0 : index
      %c0_28 = arith.constant 0 : index
      %42 = vector.load %arg4[%c0_27, %c0_28] : memref<8x128xbf16, #tpu.memory_space<vmem>>, vector<8x128xbf16>
      tpu.vector_store %arg4[%c0_27, %c0_28], %41 {strides = array<i32>} : memref<8x128xbf16, #tpu.memory_space<vmem>>, vector<8x128xbf16>,
    } else {
    }
    return
  }
  func.func @transform_0(%arg0: i32) -> (i32, i32) {
    %c0_i32 = arith.constant 0 : i32
    %c0_i32_0 = arith.constant 0 : i32
    return %c0_i32, %arg0 : i32, i32
  }
  func.func @transform_1(%arg0: i32) -> (i32, i32) {
    %c0_i32 = arith.constant 0 : i32
    %c0_i32_0 = arith.constant 0 : i32
    return %arg0, %c0_i32 : i32, i32
  }
  func.func @transform_2(%arg0: i32) -> (i32, i32) {
    %c0_i32 = arith.constant 0 : i32
    %c0_i32_0 = arith.constant 0 : i32
    %c0_i32_1 = arith.constant 0 : i32
    return %c0_i32, %c0_i32_0 : i32, i32
  }
  func.func @transform_3(%arg0: i32) -> (i32, i32) {
    %c0_i32 = arith.constant 0 : i32
    %c0_i32_0 = arith.constant 0 : i32
    %c0_i32_1 = arith.constant 0 : i32
    return %c0_i32, %c0_i32_0 : i32, i32
  }
}

module attributes {stable_mosaic.version = 11 : i64} {
  func.func @dec_kernel(%arg0: i32, %arg1: memref<8x128xbf16, #tpu.memory_space<vmem>>, %arg2: memref<128x1024xbf16, #tpu.memory_space<vmem>>, %arg3: memref<8x1024xf32, #tpu.memory_space<vmem>>) attributes {dimension_semantics = [#tpu.dimension_semantics<parallel>], iteration_bounds = array<i64: 1>, scalar_prefetch = 0 : i64, scratch_operands = 0 : i64, tpu.core_type = #tpu.core_type<tc>, window_params = [{pipeline_mode = #tpu.pipeline_mode<synchronous>, transform_indices = @transform_0, window_bounds = array<i64: 8, 128>}, {transform_indices = @transform_1, window_bounds = array<i64: 128, 1024>}, {transform_indices = @transform_2, window_bounds = array<i64: 8, 1024>}]} {
    %c0 = arith.constant 0 : index
    %c0_0 = arith.constant 0 : index
    %0 = vector.load %arg1[%c0, %c0_0] : memref<8x128xbf16, #tpu.memory_space<vmem>>, vector<8x128xbf16>
    %c0_1 = arith.constant 0 : index
    %c0_2 = arith.constant 0 : index
    %1 = vector.load %arg2[%c0_1, %c0_2] : memref<128x1024xbf16, #tpu.memory_space<vmem>>, vector<128x1024xbf16>
    %cst = arith.constant dense<0.000000e+00> : vector<8x1024xf32>
    %2 = tpu.matmul %0, %1, %cst {dimension_numbers = #tpu.dot_dimension_numbers<[1], [0], [0], [1], [0, 0, 1, 1], [], []>} : vector<8x128xbf16>, vector<128x1024xbf16>, vector<8x1024xf32> -> vector<8x1024xf32>
    %c0_3 = arith.constant 0 : index
    %c0_4 = arith.constant 0 : index
    %3 = vector.load %arg3[%c0_3, %c0_4] : memref<8x1024xf32, #tpu.memory_space<vmem>>, vector<8x1024xf32>
    tpu.vector_store %arg3[%c0_3, %c0_4], %2 {strides = array<i32>} : memref<8x1024xf32, #tpu.memory_space<vmem>>, vector<8x1024xf32>,
    return
  }
  func.func @transform_0(%arg0: i32) -> (i32, i32) {
    %c0_i32 = arith.constant 0 : i32
    %c0_i32_0 = arith.constant 0 : i32
    %c0_i32_1 = arith.constant 0 : i32
    return %c0_i32, %c0_i32_0 : i32, i32
  }
  func.func @transform_1(%arg0: i32) -> (i32, i32) {
    %c0_i32 = arith.constant 0 : i32
    %c0_i32_0 = arith.constant 0 : i32
    return %c0_i32, %arg0 : i32, i32
  }
  func.func @transform_2(%arg0: i32) -> (i32, i32) {
    %c0_i32 = arith.constant 0 : i32
    %c0_i32_0 = arith.constant 0 : i32
    return %c0_i32, %arg0 : i32, i32
  }
}

</mosaic_0001>

<bundles_post_ra>
// kernel: vae_forward.2
= control target key start
LH: loop header
LB: loop body
LE: loop exit
PB: predicated region body
PF: predicated region fallthrough
CT: control target
= control target key end

     0   :  { %vm1494_vm0 = vmmov 0   ;;  %s1909_s1 = inlined_call_operand.vmem [shape: bf16[1024,128], index: 1, kind: input, shape index: {}]   ;;  %s1910_s0 = inlined_call_operand.vmem [shape: bf16[8,1024], index: 0, kind: input, shape index: {}]   ;;  %s1911_s2 = inlined_call_operand.vmem [shape: f32[400,128], index: 2, kind: input, shape index: {}]   ;;  %s1912_s3 = inlined_call_operand.vmem [shape: bf16[8,128], index: 3, kind: output, shape index: {}]  }
   0x1   :  { %v1419_v0 = vld [vmem:[%s1909_s1 + $0x40] sm:$0xff]   ;;  %v1423_v4 = vld [vmem:[%s1909_s1 + $0x48] sm:$0xff]   ;;  %v1427_v8 = vld [vmem:[%s1909_s1 + $0x50] sm:$0xff]  }
   0x2   :  { %v1420_v1 = vld [vmem:[%s1909_s1 + $0xc0] sm:$0xff]   ;;  %1100 = vmatprep.subr.bf16.mxu0 %v1419_v0  ;;  %v1424_v5 = vld [vmem:[%s1909_s1 + $0xc8] sm:$0xff]   ;;  %v1428_v9 = vld [vmem:[%s1909_s1 + $0xd0] sm:$0xff]  }
   0x3   :  { %v1421_v2 = vld [vmem:[%s1909_s1] sm:$0xff]   ;;  %1122 = vmatprep.subr.bf16.mxu1 %v1420_v1  ;;  %v1425_v6 = vld [vmem:[%s1909_s1 + $0x8] sm:$0xff]   ;;  %v1429_v10 = vld [vmem:[%s1909_s1 + $0x10] sm:$0xff]  }
   0x4   :  { %v1422_v3 = vld [vmem:[%s1909_s1 + $0x80] sm:$0xff]   ;;  %1101 = vmatpush3.bf16.msra.mxu0 %v1421_v2  ;;  %v1426_v7 = vld [vmem:[%s1909_s1 + $0x88] sm:$0xff]   ;;  %v1430_v11 = vld [vmem:[%s1909_s1 + $0x90] sm:$0xff]  }
   0x5   :  { %1123 = vmatpush3.bf16.msra.mxu1 %v1422_v3  ;;  %1102 = vmatprep.subr.bf16.mxu0 %v1423_v4  ;;  %v1431_v12 = vld [vmem:[%s1909_s1 + $0x58] sm:$0xff]   ;;  %v1435_v16 = vld [vmem:[%s1909_s1 + $0x60] sm:$0xff]   ;;  %v1439_v20 = vld [vmem:[%s1909_s1 + $0x68] sm:$0xff]  }
   0x6   :  { %1124 = vmatprep.subr.bf16.mxu1 %v1424_v5  ;;  %v1432_v13 = vld [vmem:[%s1909_s1 + $0xd8] sm:$0xff]   ;;  %v1436_v17 = vld [vmem:[%s1909_s1 + $0xe0] sm:$0xff]   ;;  %v1440_v21 = vld [vmem:[%s1909_s1 + $0xe8] sm:$0xff]  }
   0x7   :  { %v1433_v14 = vld [vmem:[%s1909_s1 + $0x18] sm:$0xff]   ;;  %v1437_v18 = vld [vmem:[%s1909_s1 + $0x20] sm:$0xff]   ;;  %v1441_v22 = vld [vmem:[%s1909_s1 + $0x28] sm:$0xff]  }
   0x8   :  { %1103 = vmatpush3.bf16.msra.mxu0 %v1425_v6  ;;  %v1434_v15 = vld [vmem:[%s1909_s1 + $0x98] sm:$0xff]   ;;  %v1438_v19 = vld [vmem:[%s1909_s1 + $0xa0] sm:$0xff]   ;;  %v1442_v23 = vld [vmem:[%s1909_s1 + $0xa8] sm:$0xff]  }
   0x9   :  { %1125 = vmatpush3.bf16.msra.mxu1 %v1426_v7  ;;  %1104 = vmatprep.subr.bf16.mxu0 %v1427_v8  ;;  %v1443_v24 = vld [vmem:[%s1909_s1 + $0x70] sm:$0xff]   ;;  %v1447_v28 = vld [vmem:[%s1909_s1 + $0x78] sm:$0xff]   ;;  %v21_v32 = vld [vmem:[%s1910_s0] sm:$0xff] }
   0xa   :  { %1126 = vmatprep.subr.bf16.mxu1 %v1428_v9  ;;  %v1444_v25 = vld [vmem:[%s1909_s1 + $0xf0] sm:$0xff]   ;;  %v1448_v29 = vld [vmem:[%s1909_s1 + $0xf8] sm:$0xff]   ;;  %v22_v33 = vld [vmem:[%s1910_s0 + $0x8] sm:$0xff]  ;;  %v1024_v34 = vcombine.low %v21_v32, %v21_v32  ;;  %v1025_v35 = vcombine.high %v21_v32, %v21_v32 }
   0xb   :  { %v1445_v26 = vld [vmem:[%s1909_s1 + $0x30] sm:$0xff]   ;;  %v1449_v30 = vld [vmem:[%s1909_s1 + $0x38] sm:$0xff]   ;;  %v1026_v36 = vcombine.low %v22_v33, %v22_v33  ;;  %v1027_v37 = vcombine.high %v22_v33, %v22_v33  ;;  %v1455_v38 = vld [vmem:[%s1909_s1 + $0x140] sm:$0xff]  }
   0xc   :  { %1105 = vmatpush3.bf16.msra.mxu0 %v1429_v10  ;;  %v1446_v27 = vld [vmem:[%s1909_s1 + $0xb0] sm:$0xff]   ;;  %v1450_v31 = vld [vmem:[%s1909_s1 + $0xb8] sm:$0xff]   ;;  %v1456_v39 = vld [vmem:[%s1909_s1 + $0x1c0] sm:$0xff]   ;;  %597 = vmatprep.mubr.bf16.mxu0 %v1025_v35 }
   0xd   :  { %1127 = vmatpush3.bf16.msra.mxu1 %v1430_v11  ;;  %1106 = vmatprep.subr.bf16.mxu0 %v1431_v12  ;;  %v1457_v40 = vld [vmem:[%s1909_s1 + $0x100] sm:$0xff]   ;;  %v1459_v42 = vld [vmem:[%s1909_s1 + $0x148] sm:$0xff]   ;;  %v1463_v46 = vld [vmem:[%s1909_s1 + $0x150] sm:$0xff]   ;;  %v1493_v12 = vmov 0.0|0.0  }
   0xe   :  { %1128 = vmatprep.subr.bf16.mxu1 %v1432_v13  ;;  %637 = vmatprep.mubr.bf16.mxu1 %v1027_v37  ;;  %v1458_v41 = vld [vmem:[%s1909_s1 + $0x180] sm:$0xff]   ;;  %v1460_v43 = vld [vmem:[%s1909_s1 + $0x1c8] sm:$0xff]   ;;  %v1464_v47 = vld [vmem:[%s1909_s1 + $0x1d0] sm:$0xff]  }
   0xf   :  { %v1461_v44 = vld [vmem:[%s1909_s1 + $0x108] sm:$0xff]   ;;  %v1465_v48 = vld [vmem:[%s1909_s1 + $0x110] sm:$0xff]   ;;  %v1467_v50 = vld [vmem:[%s1909_s1 + $0x158] sm:$0xff]  }
  0x10   :  { %1107 = vmatpush3.bf16.msra.mxu0 %v1433_v14  ;;  %v1462_v45 = vld [vmem:[%s1909_s1 + $0x188] sm:$0xff]   ;;  %v1466_v49 = vld [vmem:[%s1909_s1 + $0x190] sm:$0xff]   ;;  %v1468_v51 = vld [vmem:[%s1909_s1 + $0x1d8] sm:$0xff]  }
  0x11   :  { %1129 = vmatpush3.bf16.msra.mxu1 %v1434_v15  ;;  %1108 = vmatprep.subr.bf16.mxu0 %v1435_v16  ;;  %v1469_v52 = vld [vmem:[%s1909_s1 + $0x118] sm:$0xff]   ;;  %v1471_v54 = vld [vmem:[%s1909_s1 + $0x160] sm:$0xff]   ;;  %v1475_v58 = vld [vmem:[%s1909_s1 + $0x168] sm:$0xff]  }
  0x12   :  { %1130 = vmatprep.subr.bf16.mxu1 %v1436_v17  ;;  %v1470_v53 = vld [vmem:[%s1909_s1 + $0x198] sm:$0xff]   ;;  %v1472_v55 = vld [vmem:[%s1909_s1 + $0x1e0] sm:$0xff]   ;;  %v1476_v59 = vld [vmem:[%s1909_s1 + $0x1e8] sm:$0xff]  }
  0x13   :  { %v1473_v56 = vld [vmem:[%s1909_s1 + $0x120] sm:$0xff]   ;;  %v1477_v60 = vld [vmem:[%s1909_s1 + $0x128] sm:$0xff]   ;;  %v1479_v62 = vld [vmem:[%s1909_s1 + $0x170] sm:$0xff]  }
  0x14   :  { %1109 = vmatpush3.bf16.msra.mxu0 %v1437_v18  ;;  %v1474_v57 = vld [vmem:[%s1909_s1 + $0x1a0] sm:$0xff]   ;;  %v1478_v61 = vld [vmem:[%s1909_s1 + $0x1a8] sm:$0xff]   ;;  %v1480_v63 = vld [vmem:[%s1909_s1 + $0x1f0] sm:$0xff]  }
  0x15   :  { %1131 = vmatpush3.bf16.msra.mxu1 %v1438_v19  ;;  %1110 = vmatprep.subr.bf16.mxu0 %v1439_v20  ;;  %v1481_v0 = vld [vmem:[%s1909_s1 + $0x130] sm:$0xff]   ;;  %v1483_v2 = vld [vmem:[%s1909_s1 + $0x178] sm:$0xff]   ;;  %v737_v18 = vld [vmem:[%s1911_s2 + $0x20] sm:$0xff] }
  0x16   :  { %1132 = vmatprep.subr.bf16.mxu1 %v1440_v21  ;;  %v1482_v1 = vld [vmem:[%s1909_s1 + $0x1b0] sm:$0xff]   ;;  %v1484_v3 = vld [vmem:[%s1909_s1 + $0x1f8] sm:$0xff]   ;;  %v738_v19 = vld [vmem:[%s1911_s2 + $0x28] sm:$0xff] }
  0x17   :  { %v1485_v4 = vld [vmem:[%s1909_s1 + $0x138] sm:$0xff]   ;;  %v23_v6 = vld [vmem:[%s1910_s0 + $0x10] sm:$0xff]  ;;  %v753_v21 = vld [vmem:[%s1911_s2 + $0xa0] sm:$0xff] }
  0x18   :  { %1111 = vmatpush3.bf16.msra.mxu0 %v1441_v22  ;;  %v1486_v5 = vld [vmem:[%s1909_s1 + $0x1b8] sm:$0xff]   ;;  %v1028_v7 = vcombine.low %v23_v6, %v23_v6  ;;  %v1029_v8 = vcombine.high %v23_v6, %v23_v6  ;;  %v735_v13 = vld [vmem:[%s1911_s2 + $0x10] sm:$0xff]  ;;  %v754_v22 = vld [vmem:[%s1911_s2 + $0xa8] sm:$0xff] }
  0x19   :  { %1133 = vmatpush3.bf16.msra.mxu1 %v1442_v23  ;;  %1112 = vmatprep.subr.bf16.mxu0 %v1443_v24  ;;  %v24_v9 = vld [vmem:[%s1910_s0 + $0x18] sm:$0xff]  ;;  %v751_v15 = vld [vmem:[%s1911_s2 + $0x90] sm:$0xff]  ;;  %v1348_v23 = vpack.c.bf16 %v738_v19, %v737_v18  ;;  %v1372_v24 = vpack.c.bf16 %v754_v22, %v753_v21  ;;  %v742_v32 = vld [vmem:[%s1911_s2 + $0x48] sm:$0xff] }
  0x1a   :  { %1134 = vmatprep.subr.bf16.mxu1 %v1444_v25  ;;  %v1030_v10 = vcombine.low %v24_v9, %v24_v9  ;;  %v1031_v11 = vcombine.high %v24_v9, %v24_v9  ;;  %v736_v14 = vld [vmem:[%s1911_s2 + $0x18] sm:$0xff]  ;;  %v739_v25 = vld [vmem:[%s1911_s2 + $0x30] sm:$0xff]  ;;  %v757_v33 = vld [vmem:[%s1911_s2 + $0xc0] sm:$0xff] }
  0x1b   :  { %v1345_v16 = vpack.c.bf16 %v736_v14, %v735_v13  ;;  %v752_v17 = vld [vmem:[%s1911_s2 + $0x98] sm:$0xff]  ;;  %v743_v37 = vld [vmem:[%s1911_s2 + $0x50] sm:$0xff]  ;;  %v1096_v21 = vld [vmem:[%s1911_s2] ss:$0 sm:$0xff] }
  0x1c   :  { %1113 = vmatpush3.bf16.msra.mxu0 %v1445_v26  ;;  %v1369_v20 = vpack.c.bf16 %v752_v17, %v751_v15  ;;  %v740_v26 = vld [vmem:[%s1911_s2 + $0x38] sm:$0xff] }
  0x1d   :  { %1135 = vmatpush3.bf16.msra.mxu1 %v1446_v27  ;;  %1114 = vmatprep.subr.bf16.mxu0 %v1447_v28  ;;  %v755_v27 = vld [vmem:[%s1911_s2 + $0xb0] sm:$0xff]  ;;  %v756_v28 = vld [vmem:[%s1911_s2 + $0xb8] sm:$0xff] }
  0x1e   :  { %1136 = vmatprep.subr.bf16.mxu1 %v1448_v29  ;;  %v1351_v29 = vpack.c.bf16 %v740_v26, %v739_v25 }
  0x20   :  { %1115 = vmatpush3.bf16.msra.mxu0 %v1449_v30  ;;  %v1375_v30 = vpack.c.bf16 %v756_v28, %v755_v27  ;;  %v769_v28 = vld [vmem:[%s1911_s2 + $0x120] sm:$0xff] }
  0x21   :  { %1137 = vmatpush3.bf16.msra.mxu1 %v1450_v31  ;;  %1144 = vmatprep.subr.bf16.mxu0 %v1455_v38  ;;  %v741_v31 = vld [vmem:[%s1911_s2 + $0x40] sm:$0xff]  ;;  %v744_v38 = vld [vmem:[%s1911_s2 + $0x58] sm:$0xff] }
  0x22   :  { %1166 = vmatprep.subr.bf16.mxu1 %v1456_v39  ;;  %v1354_v35 = vpack.c.bf16 %v742_v32, %v741_v31  ;;  %v759_v39 = vld [vmem:[%s1911_s2 + $0xd0] sm:$0xff]  ;;  %v772_v32 = vld [vmem:[%s1911_s2 + $0x138] sm:$0xff] }
  0x23   :  { %598 = vmatmul.mubr.bf16.vlgmr.msra.gmra.mrb[0].mxu0 %v1024_v34  ;;  %v758_v34 = vld [vmem:[%s1911_s2 + $0xc8] sm:$0xff]  ;;  %v771_v31 = vld [vmem:[%s1911_s2 + $0x130] sm:$0xff] }
  0x24   :  { %638 = vmatmul.mubr.bf16.vlgmr.msra.gmra.mrb[0].mxu1 %v1026_v36  ;;  %1145 = vmatpush3.bf16.msra.mxu0 %v1457_v40  ;;  %v1378_v36 = vpack.c.bf16 %v758_v34, %v757_v33  ;;  %v760_v40 = vld [vmem:[%s1911_s2 + $0xd8] sm:$0xff]  ;;  %v1399_v33 = vpack.c.bf16 %v772_v32, %v771_v31  ;;  %v773_v34 = vld [vmem:[%s1911_s2 + $0x140] sm:$0xff] }
  0x25   :  { %1167 = vmatpush3.bf16.msra.mxu1 %v1458_v41  ;;  %1146 = vmatprep.subr.bf16.mxu0 %v1459_v42  ;;  %v1357_v41 = vpack.c.bf16 %v744_v38, %v743_v37  ;;  %v1381_v42 = vpack.c.bf16 %v760_v40, %v759_v39  ;;  %v775_v37 = vld [vmem:[%s1911_s2 + $0x150] sm:$0xff]  ;;  %v776_v38 = vld [vmem:[%s1911_s2 + $0x158] sm:$0xff]  ;;  %v777_v40 = vld [vmem:[%s1911_s2 + $0x160] sm:$0xff] }
  0x26   :  { %1168 = vmatprep.subr.bf16.mxu1 %v1460_v43  ;;  %677 = vmatprep.mubr.bf16.mxu0 %v1029_v8  ;;  %v745_v43 = vld [vmem:[%s1911_s2 + $0x60] sm:$0xff]  ;;  %v1405_v39 = vpack.c.bf16 %v776_v38, %v775_v37 }
  0x27   :  { %717 = vmatprep.mubr.bf16.mxu1 %v1031_v11 }
  0x28   :  { %1147 = vmatpush3.bf16.msra.mxu0 %v1461_v44  ;;  %v746_v44 = vld [vmem:[%s1911_s2 + $0x68] sm:$0xff] }
  0x29   :  { %1169 = vmatpush3.bf16.msra.mxu1 %v1462_v45  ;;  %1148 = vmatprep.subr.bf16.mxu0 %v1463_v46  ;;  %v761_v45 = vld [vmem:[%s1911_s2 + $0xe0] sm:$0xff]  ;;  %v1360_v46 = vpack.c.bf16 %v746_v44, %v745_v43  ;;  %v779_v43 = vld [vmem:[%s1911_s2 + $0x170] sm:$0xff]  ;;  %v780_v44 = vld [vmem:[%s1911_s2 + $0x178] sm:$0xff] }
  0x2a   :  { %1170 = vmatprep.subr.bf16.mxu1 %v1464_v47  ;;  %v762_v47 = vld [vmem:[%s1911_s2 + $0xe8] sm:$0xff] }
  0x2c   :  { %1149 = vmatpush3.bf16.msra.mxu0 %v1465_v48  ;;  %v1384_v48 = vpack.c.bf16 %v762_v47, %v761_v45  ;;  %v1411_v45 = vpack.c.bf16 %v780_v44, %v779_v43  ;;  %v782_v47 = vld [vmem:[%s1911_s2 + $0x188] sm:$0xff] }
  0x2d   :  { %1171 = vmatpush3.bf16.msra.mxu1 %v1466_v49  ;;  %1150 = vmatprep.subr.bf16.mxu0 %v1467_v50  ;;  %v747_v49 = vld [vmem:[%s1911_s2 + $0x70] sm:$0xff]  ;;  %v748_v50 = vld [vmem:[%s1911_s2 + $0x78] sm:$0xff] }
  0x2e   :  { %1172 = vmatprep.subr.bf16.mxu1 %v1468_v51  ;;  %v763_v51 = vld [vmem:[%s1911_s2 + $0xf0] sm:$0xff] }
  0x30   :  { %1151 = vmatpush3.bf16.msra.mxu0 %v1469_v52  ;;  %v1363_v52 = vpack.c.bf16 %v748_v50, %v747_v49  ;;  %v1098_v49 = vld [vmem:[%s1911_s2 + $0x2] ss:$0 sm:$0xff] }
  0x31   :  { %1173 = vmatpush3.bf16.msra.mxu1 %v1470_v53  ;;  %1152 = vmatprep.subr.bf16.mxu0 %v1471_v54  ;;  %v764_v53 = vld [vmem:[%s1911_s2 + $0xf8] sm:$0xff] }
  0x32   :  { %1174 = vmatprep.subr.bf16.mxu1 %v1472_v55  ;;  %v1387_v54 = vpack.c.bf16 %v764_v53, %v763_v51  ;;  %v749_v55 = vld [vmem:[%s1911_s2 + $0x80] sm:$0xff] }
  0x34   :  { %1153 = vmatpush3.bf16.msra.mxu0 %v1473_v56  ;;  %v750_v56 = vld [vmem:[%s1911_s2 + $0x88] sm:$0xff] }
  0x35   :  { %1175 = vmatpush3.bf16.msra.mxu1 %v1474_v57  ;;  %1154 = vmatprep.subr.bf16.mxu0 %v1475_v58  ;;  %v1366_v57 = vpack.c.bf16 %v750_v56, %v749_v55  ;;  %v765_v58 = vld [vmem:[%s1911_s2 + $0x100] sm:$0xff] }
  0x36   :  { %1176 = vmatprep.subr.bf16.mxu1 %v1476_v59  ;;  %v766_v59 = vld [vmem:[%s1911_s2 + $0x108] sm:$0xff] }
  0x38   :  { %1155 = vmatpush3.bf16.msra.mxu0 %v1477_v60  ;;  %v1390_v60 = vpack.c.bf16 %v766_v59, %v765_v58 }
  0x39   :  { %1177 = vmatpush3.bf16.msra.mxu1 %v1478_v61  ;;  %1156 = vmatprep.subr.bf16.mxu0 %v1479_v62  ;;  %v1495_v61 = vmov 0.0  }
  0x3a   :  { %1178 = vmatprep.subr.bf16.mxu1 %v1480_v63 }
  0x3c   :  { %1157 = vmatpush3.bf16.msra.mxu0 %v1481_v0 }
  0x3d   :  { %1179 = vmatpush3.bf16.msra.mxu1 %v1482_v1  ;;  %1158 = vmatprep.subr.bf16.mxu0 %v1483_v2 }
  0x3e   :  { %1180 = vmatprep.subr.bf16.mxu1 %v1484_v3 }
  0x40   :  { %1159 = vmatpush3.bf16.msra.mxu0 %v1485_v4 }
  0x41   :  { %1181 = vmatpush3.bf16.msra.mxu1 %v1486_v5  ;;  %1344 = vmatprep.subr.bf16.mxu0 %v1493_v12 }
  0x42   :  { %1368 = vmatprep.subr.bf16.mxu1 %v1493_v12 }
  0x43   :  { %678 = vmatmul.mubr.bf16.vlgmr.msra.gmra.mrb[4].mxu0 %v1028_v7 }
  0x44   :  { %718 = vmatmul.mubr.bf16.vlgmr.msra.gmra.mrb[4].mxu1 %v1030_v10  ;;  %1346 = vmatpush3.bf16.msra.mxu0 %v1345_v16 }
  0x45   :  { %1370 = vmatpush3.bf16.msra.mxu1 %v1369_v20  ;;  %1347 = vmatprep.subr.bf16.mxu0 %v1493_v12 }
  0x46   :  { %1371 = vmatprep.subr.bf16.mxu1 %v1493_v12  ;;  %1271 = vmatprep.mubr.msk.f32.mxu0 %vm1494_vm0, %v1495_v61 }
  0x47   :  { %1306 = vmatprep.mubr.msk.f32.mxu1 %vm1494_vm0, %v1495_v61 }
  0x48   :  { %1349 = vmatpush3.bf16.msra.mxu0 %v1348_v23  ;;  %v767_v23 = vld [vmem:[%s1911_s2 + $0x110] sm:$0xff] }
  0x49   :  { %1373 = vmatpush3.bf16.msra.mxu1 %v1372_v24  ;;  %1350 = vmatprep.subr.bf16.mxu0 %v1493_v12  ;;  %v768_v24 = vld [vmem:[%s1911_s2 + $0x118] sm:$0xff] }
  0x4a   :  { %1374 = vmatprep.subr.bf16.mxu1 %v1493_v12  ;;  %v1393_v26 = vpack.c.bf16 %v768_v24, %v767_v23 }
  0x4c   :  { %1352 = vmatpush3.bf16.msra.mxu0 %v1351_v29  ;;  %v770_v29 = vld [vmem:[%s1911_s2 + $0x128] sm:$0xff] }
  0x4d   :  { %1376 = vmatpush3.bf16.msra.mxu1 %v1375_v30  ;;  %1353 = vmatprep.subr.bf16.mxu0 %v1493_v12  ;;  %v1396_v30 = vpack.c.bf16 %v770_v29, %v769_v28 }
  0x4e   :  { %1377 = vmatprep.subr.bf16.mxu1 %v1493_v12 }
  0x50   :  { %1355 = vmatpush3.bf16.msra.mxu0 %v1354_v35  ;;  %v774_v35 = vld [vmem:[%s1911_s2 + $0x148] sm:$0xff] }
  0x51   :  { %1379 = vmatpush3.bf16.msra.mxu1 %v1378_v36  ;;  %1356 = vmatprep.subr.bf16.mxu0 %v1493_v12  ;;  %v1402_v36 = vpack.c.bf16 %v774_v35, %v773_v34 }
  0x52   :  { %1380 = vmatprep.subr.bf16.mxu1 %v1493_v12 }
  0x54   :  { %1358 = vmatpush3.bf16.msra.mxu0 %v1357_v41  ;;  %v778_v41 = vld [vmem:[%s1911_s2 + $0x168] sm:$0xff] }
  0x55   :  { %1382 = vmatpush3.bf16.msra.mxu1 %v1381_v42  ;;  %1359 = vmatprep.subr.bf16.mxu0 %v1493_v12  ;;  %v1408_v42 = vpack.c.bf16 %v778_v41, %v777_v40 }
  0x56   :  { %1383 = vmatprep.subr.bf16.mxu1 %v1493_v12 }
  0x58   :  { %1361 = vmatpush3.bf16.msra.mxu0 %v1360_v46  ;;  %v781_v46 = vld [vmem:[%s1911_s2 + $0x180] sm:$0xff] }
  0x59   :  { %1385 = vmatpush3.bf16.msra.mxu1 %v1384_v48  ;;  %1362 = vmatprep.subr.bf16.mxu0 %v1493_v12  ;;  %v1414_v48 = vpack.c.bf16 %v782_v47, %v781_v46 }
  0x5a   :  { %1386 = vmatprep.subr.bf16.mxu1 %v1493_v12 }
  0x5c   :  { %1364 = vmatpush3.bf16.msra.mxu0 %v1363_v52 }
  0x5d   :  { %1388 = vmatpush3.bf16.msra.mxu1 %v1387_v54  ;;  %1365 = vmatprep.subr.bf16.mxu0 %v1493_v12 }
  0x5e   :  { %1389 = vmatprep.subr.bf16.mxu1 %v1493_v12 }
  0x60   :  { %1367 = vmatpush3.bf16.msra.mxu0 %v1366_v57  ;;  %v1097_v57 = vld [vmem:[%s1911_s2 + $0x1] ss:$0 sm:$0xff] }
  0x61   :  { %1391 = vmatpush3.bf16.msra.mxu1 %v1390_v60  ;;  %1392 = vmatprep.subr.bf16.mxu0 %v1493_v12 }
  0xf6   :  { %v1116_v62 = vpop.f32.mrb[0].mxu0 }
  0xf7   :  { %v1138_v63 = vpop.f32.mrb[0].mxu1  ;;  %v1117_v0 = vpop.f32.mrb[1].mxu0 }
  0xf8   :  { %v1139_v1 = vpop.f32.mrb[1].mxu1  ;;  %v1118_v2 = vadd.f32 %v1117_v0, %v1116_v62  ;;  %v1119_v4 = vpop.f32.mrb[2].mxu0  ;;  %v1099_v62 = vld [vmem:[%s1911_s2 + $0x3] ss:$0 sm:$0xff] }
  0xf9   :  { %v1140_v3 = vadd.f32 %v1139_v1, %v1138_v63  ;;  %v1141_v5 = vpop.f32.mrb[2].mxu1  ;;  %v1120_v6 = vpop.f32.mrb[3].mxu0 }
  0xfa   :  { %v1142_v7 = vpop.f32.mrb[3].mxu1 }
  0xfb   :  { %v640_v8 = vadd.f32 %v1140_v3, %v1118_v2 }
 0x116   :  { %v1160_v9 = vpop.f32.mrb[4].mxu0 }
 0x117   :  { %v1182_v10 = vpop.f32.mrb[4].mxu1  ;;  %v1161_v11 = vpop.f32.mrb[5].mxu0 }
 0x118   :  { %v1183_v13 = vpop.f32.mrb[5].mxu1  ;;  %v1162_v14 = vadd.f32 %v1161_v11, %v1160_v9  ;;  %v1163_v16 = vpop.f32.mrb[6].mxu0 }
 0x119   :  { %v1184_v15 = vadd.f32 %v1183_v13, %v1182_v10  ;;  %v1185_v17 = vpop.f32.mrb[6].mxu1  ;;  %v1164_v18 = vpop.f32.mrb[7].mxu0 }
 0x11a   :  { %v1186_v19 = vpop.f32.mrb[7].mxu1  ;;  %v680_v20 = vadd.f32 %v1162_v14, %v640_v8 }
 0x11c   :  { %v720_v22 = vadd.f32 %v1184_v15, %v680_v20 }
 0x11e   :  { %v788_v25 = vadd.f32 %v1096_v21, %v720_v22 }
 0x120   :  { %v789_v27 = vmax.f32 %v788_v25, 0.0 }
 0x122   :  { %1272 = vmatmul.mubr.f32.vlgmr.msra.gmra.mrb[8].mxu0 %v789_v27  ;;  %1307 = vmatmul.mubr.f32.vlgmr.msra.gmra.mrb[8].mxu1 %v789_v27 }
 0x123   :  { %1394 = vmatpush3.bf16.msra.mxu0 %v1393_v26  ;;  %1341 = vmatprep.mubr.msk.f32.mxu0 %vm1494_vm0, %v1495_v61 }
 0x124   :  { %1395 = vmatprep.subr.bf16.mxu0 %v1493_v12 }
 0x127   :  { %1397 = vmatpush3.bf16.msra.mxu0 %v1396_v30 }
 0x128   :  { %1398 = vmatprep.subr.bf16.mxu0 %v1493_v12 }
 0x12b   :  { %1400 = vmatpush3.bf16.msra.mxu0 %v1399_v33 }
 0x12c   :  { %1401 = vmatprep.subr.bf16.mxu0 %v1493_v12 }
 0x12f   :  { %1403 = vmatpush3.bf16.msra.mxu0 %v1402_v36 }
 0x130   :  { %1404 = vmatprep.subr.bf16.mxu0 %v1493_v12 }
 0x133   :  { %1406 = vmatpush3.bf16.msra.mxu0 %v1405_v39 }
 0x134   :  { %1407 = vmatprep.subr.bf16.mxu0 %v1493_v12 }
 0x137   :  { %1409 = vmatpush3.bf16.msra.mxu0 %v1408_v42 }
 0x138   :  { %1410 = vmatprep.subr.bf16.mxu0 %v1493_v12 }
 0x13b   :  { %1412 = vmatpush3.bf16.msra.mxu0 %v1411_v45 }
 0x13c   :  { %1413 = vmatprep.subr.bf16.mxu0 %v1493_v12  ;;  %v734_v12 = vld [vmem:[%s1911_s2 + $0x8] sm:$0xff] }
 0x13f   :  { %1415 = vmatpush3.bf16.msra.mxu0 %v1414_v48 }
 0x1f5   :  { %v860_v50 = vpop.f32.mrb[8].mxu0  ;;  %v934_v51 = vpop.f32.mrb[8].mxu1 }
 0x1f6   :  { %v935_v52 = vadd.f32 %v1098_v49, %v934_v51  ;;  %v1273_v53 = vpop.f32.mrb[9].mxu0  ;;  %v1308_v54 = vpop.f32.mrb[9].mxu1  ;;  %v861_v59 = vadd.f32 %v1097_v57, %v860_v50 }
 0x1f8   :  { %v938_v55 = vmul.f32 0.5, %v935_v52 }
 0x1fa   :  { %v939_v56 = vmul.f32 1.442695, %v938_v55 }
 0x1fc   :  { %1491 = vpow2.f32 %v939_v56 }
 0x206   :  { %v1492_v58 = vpop.eup %1491 }
 0x207   :  { %v941_v60 = vmul.f32 %v1492_v58, %v734_v12 }
 0x209   :  { %v942_v61 = vadd.f32 %v941_v60, %v861_v59 }
 0x20b   :  { %1342 = vmatmul.mubr.f32.vlgmr.msra.gmra.mrb[10].mxu0 %v942_v61 }
 0x2de   :  { %v1013_v63 = vpop.f32.mrb[10].mxu0 }
 0x2df   :  { %v1014_v0 = vadd.f32 %v1099_v62, %v1013_v63  ;;  %v1343_v1 = vpop.f32.mrb[11].mxu0 }
 0x2e1   :  { %v1017_v2 = vmax.f32 %v1014_v0, 0.0 }
 0x2e3   :  { %v1018_v3 = vpack.c.bf16 %v1017_v2, %v1017_v2 }
 0x2e5   :  { %1019 = vst [vmem:[%s1912_s3] sm:$0xf] %v1018_v3 }

// kernel: vae_forward.3
= control target key start
LH: loop header
LB: loop body
LE: loop exit
PB: predicated region body
PF: predicated region fallthrough
CT: control target
= control target key end

     0   :  { %v638_v3 = vmov 0   ;;  %s883_s1 = inlined_call_operand.vmem [shape: bf16[128,1024], index: 1, kind: input, shape index: {}]   ;;  %s884_s0 = inlined_call_operand.vmem [shape: bf16[8,128], index: 0, kind: input, shape index: {}]   ;;  %s885_s2 = inlined_call_operand.vmem [shape: f32[8,1024], index: 2, kind: output, shape index: {}]  }
   0x1   :  { %v13_v0 = vld [vmem:[%s883_s1] sm:$0xff]  ;;  %v14_v2 = vld [vmem:[%s883_s1 + $0x8] sm:$0xff]  ;;  %429 = vmatprep.mubr.bf16.mxu0 %v638_v3  ;;  %470 = vmatprep.mubr.bf16.mxu1 %v638_v3  ;;  %v15_v63 = vld [vmem:[%s883_s1 + $0x10] sm:$0xff] }
   0x2   :  { %v17_v1 = vld [vmem:[%s883_s1 + $0x20] sm:$0xff]  ;;  %v18_v5 = vld [vmem:[%s883_s1 + $0x28] sm:$0xff] }
   0x3   :  { %v574_v4 = vcombine.high %v13_v0, %v17_v1  ;;  %v573_v6 = vcombine.low %v13_v0, %v17_v1  ;;  %v21_v7 = vld [vmem:[%s883_s1 + $0x40] sm:$0xff]  ;;  %v576_v9 = vcombine.high %v14_v2, %v18_v5  ;;  %v575_v10 = vcombine.low %v14_v2, %v18_v5  ;;  %v22_v12 = vld [vmem:[%s883_s1 + $0x48] sm:$0xff]  ;;  %v19_v0 = vld [vmem:[%s883_s1 + $0x30] sm:$0xff] }
   0x4   :  { %v25_v8 = vld [vmem:[%s883_s1 + $0x60] sm:$0xff]  ;;  %v26_v13 = vld [vmem:[%s883_s1 + $0x68] sm:$0xff]  ;;  %v16_v1 = vld [vmem:[%s883_s1 + $0x18] sm:$0xff] }
   0x5   :  { %v582_v11 = vcombine.high %v21_v7, %v25_v8  ;;  %v29_v14 = vld [vmem:[%s883_s1 + $0x80] sm:$0xff]  ;;  %397 = vmatprep.subr.bf16.mxu0 %v574_v4  ;;  %v584_v15 = vcombine.high %v22_v12, %v26_v13  ;;  %v30_v17 = vld [vmem:[%s883_s1 + $0x88] sm:$0xff]  ;;  %438 = vmatprep.subr.bf16.mxu1 %v576_v9  ;;  %v581_v19 = vcombine.low %v21_v7, %v25_v8  ;;  %v20_v2 = vld [vmem:[%s883_s1 + $0x38] sm:$0xff] }
   0x6   :  { %v33_v16 = vld [vmem:[%s883_s1 + $0xa0] sm:$0xff]  ;;  %v34_v18 = vld [vmem:[%s883_s1 + $0xa8] sm:$0xff]  ;;  %398 = vmatpush1.bf16.msra.mxu0 %v573_v6  ;;  %439 = vmatpush1.bf16.msra.mxu1 %v575_v10  ;;  %v583_v20 = vcombine.low %v22_v12, %v26_v13  ;;  %v578_v6 = vcombine.high %v15_v63, %v19_v0  ;;  %v580_v7 = vcombine.high %v16_v1, %v20_v2  ;;  %v23_v8 = vld [vmem:[%s883_s1 + $0x50] sm:$0xff] }
   0x7   :  { %399 = vmatprep.subr.bf16.mxu0 %v582_v11  ;;  %v590_v21 = vcombine.high %v29_v14, %v33_v16  ;;  %440 = vmatprep.subr.bf16.mxu1 %v584_v15  ;;  %v592_v22 = vcombine.high %v30_v17, %v34_v18  ;;  %v37_v23 = vld [vmem:[%s883_s1 + $0xc0] sm:$0xff]  ;;  %v38_v25 = vld [vmem:[%s883_s1 + $0xc8] sm:$0xff]  ;;  %v589_v27 = vcombine.low %v29_v14, %v33_v16  ;;  %v27_v9 = vld [vmem:[%s883_s1 + $0x70] sm:$0xff] }
   0x8   :  { %v41_v24 = vld [vmem:[%s883_s1 + $0xe0] sm:$0xff]  ;;  %v42_v26 = vld [vmem:[%s883_s1 + $0xe8] sm:$0xff]  ;;  %v591_v28 = vcombine.low %v30_v17, %v34_v18  ;;  %v24_v10 = vld [vmem:[%s883_s1 + $0x58] sm:$0xff]  ;;  %v577_v13 = vcombine.low %v15_v63, %v19_v0  ;;  %v579_v14 = vcombine.low %v16_v1, %v20_v2  ;;  %v586_v15 = vcombine.high %v23_v8, %v27_v9 }
   0x9   :  { %v598_v29 = vcombine.high %v37_v23, %v41_v24  ;;  %v600_v30 = vcombine.high %v38_v25, %v42_v26  ;;  %v45_v31 = vld [vmem:[%s883_s1 + $0x100] sm:$0xff]  ;;  %v46_v33 = vld [vmem:[%s883_s1 + $0x108] sm:$0xff]  ;;  %v597_v35 = vcombine.low %v37_v23, %v41_v24  ;;  %v599_v36 = vcombine.low %v38_v25, %v42_v26  ;;  %v28_v11 = vld [vmem:[%s883_s1 + $0x78] sm:$0xff] }
   0xa   :  { %400 = vmatpush1.bf16.msra.mxu0 %v581_v19  ;;  %441 = vmatpush1.bf16.msra.mxu1 %v583_v20  ;;  %v49_v32 = vld [vmem:[%s883_s1 + $0x120] sm:$0xff]  ;;  %v50_v34 = vld [vmem:[%s883_s1 + $0x128] sm:$0xff]  ;;  %v588_v16 = vcombine.high %v24_v10, %v28_v11  ;;  %v31_v17 = vld [vmem:[%s883_s1 + $0x90] sm:$0xff] }
   0xb   :  { %401 = vmatprep.subr.bf16.mxu0 %v590_v21  ;;  %442 = vmatprep.subr.bf16.mxu1 %v592_v22  ;;  %v606_v37 = vcombine.high %v45_v31, %v49_v32  ;;  %v608_v38 = vcombine.high %v46_v33, %v50_v34  ;;  %v53_v39 = vld [vmem:[%s883_s1 + $0x140] sm:$0xff]  ;;  %v54_v41 = vld [vmem:[%s883_s1 + $0x148] sm:$0xff]  ;;  %v605_v43 = vcombine.low %v45_v31, %v49_v32  ;;  %v35_v18 = vld [vmem:[%s883_s1 + $0xb0] sm:$0xff] }
   0xc   :  { %v57_v40 = vld [vmem:[%s883_s1 + $0x160] sm:$0xff]  ;;  %v58_v42 = vld [vmem:[%s883_s1 + $0x168] sm:$0xff]  ;;  %v607_v44 = vcombine.low %v46_v33, %v50_v34  ;;  %v32_v19 = vld [vmem:[%s883_s1 + $0x98] sm:$0xff]  ;;  %v585_v21 = vcombine.low %v23_v8, %v27_v9  ;;  %v587_v22 = vcombine.low %v24_v10, %v28_v11  ;;  %v594_v23 = vcombine.high %v31_v17, %v35_v18 }
   0xd   :  { %v614_v45 = vcombine.high %v53_v39, %v57_v40  ;;  %v616_v46 = vcombine.high %v54_v41, %v58_v42  ;;  %v61_v47 = vld [vmem:[%s883_s1 + $0x180] sm:$0xff]  ;;  %v62_v49 = vld [vmem:[%s883_s1 + $0x188] sm:$0xff]  ;;  %v613_v51 = vcombine.low %v53_v39, %v57_v40  ;;  %v615_v52 = vcombine.low %v54_v41, %v58_v42  ;;  %v36_v20 = vld [vmem:[%s883_s1 + $0xb8] sm:$0xff] }
   0xe   :  { %402 = vmatpush1.bf16.msra.mxu0 %v589_v27  ;;  %443 = vmatpush1.bf16.msra.mxu1 %v591_v28  ;;  %v65_v48 = vld [vmem:[%s883_s1 + $0x1a0] sm:$0xff]  ;;  %v66_v50 = vld [vmem:[%s883_s1 + $0x1a8] sm:$0xff]  ;;  %v596_v24 = vcombine.high %v32_v19, %v36_v20  ;;  %v39_v25 = vld [vmem:[%s883_s1 + $0xd0] sm:$0xff] }
   0xf   :  { %403 = vmatprep.subr.bf16.mxu0 %v598_v29  ;;  %444 = vmatprep.subr.bf16.mxu1 %v600_v30  ;;  %v622_v53 = vcombine.high %v61_v47, %v65_v48  ;;  %v624_v54 = vcombine.high %v62_v49, %v66_v50  ;;  %v69_v55 = vld [vmem:[%s883_s1 + $0x1c0] sm:$0xff]  ;;  %v70_v57 = vld [vmem:[%s883_s1 + $0x1c8] sm:$0xff]  ;;  %v621_v59 = vcombine.low %v61_v47, %v65_v48  ;;  %v43_v26 = vld [vmem:[%s883_s1 + $0xf0] sm:$0xff] }
  0x10   :  { %v73_v56 = vld [vmem:[%s883_s1 + $0x1e0] sm:$0xff]  ;;  %v74_v58 = vld [vmem:[%s883_s1 + $0x1e8] sm:$0xff]  ;;  %v623_v60 = vcombine.low %v62_v49, %v66_v50  ;;  %v40_v27 = vld [vmem:[%s883_s1 + $0xd8] sm:$0xff]  ;;  %v593_v29 = vcombine.low %v31_v17, %v35_v18  ;;  %v595_v30 = vcombine.low %v32_v19, %v36_v20  ;;  %v602_v31 = vcombine.high %v39_v25, %v43_v26 }
  0x11   :  { %v630_v61 = vcombine.high %v69_v55, %v73_v56  ;;  %v632_v62 = vcombine.high %v70_v57, %v74_v58  ;;  %v629_v4 = vcombine.low %v69_v55, %v73_v56  ;;  %v631_v5 = vcombine.low %v70_v57, %v74_v58  ;;  %v779_v12 = vld [vmem:[%s884_s0] sm:$0xf]  ;;  %v44_v28 = vld [vmem:[%s883_s1 + $0xf8] sm:$0xff]  ;;  %v47_v33 = vld [vmem:[%s883_s1 + $0x110] sm:$0xff] }
  0x12   :  { %404 = vmatpush1.bf16.msra.mxu0 %v597_v35  ;;  %445 = vmatpush1.bf16.msra.mxu1 %v599_v36  ;;  %v604_v32 = vcombine.high %v40_v27, %v44_v28  ;;  %v51_v34 = vld [vmem:[%s883_s1 + $0x130] sm:$0xff]  ;;  %v52_v35 = vld [vmem:[%s883_s1 + $0x138] sm:$0xff]  ;;  %v601_v36 = vcombine.low %v39_v25, %v43_v26 }
  0x13   :  { %405 = vmatprep.subr.bf16.mxu0 %v606_v37  ;;  %446 = vmatprep.subr.bf16.mxu1 %v608_v38  ;;  %v603_v37 = vcombine.low %v40_v27, %v44_v28  ;;  %v610_v38 = vcombine.high %v47_v33, %v51_v34  ;;  %v55_v40 = vld [vmem:[%s883_s1 + $0x150] sm:$0xff]  ;;  %v56_v42 = vld [vmem:[%s883_s1 + $0x158] sm:$0xff] }
  0x14   :  { %v59_v41 = vld [vmem:[%s883_s1 + $0x170] sm:$0xff]  ;;  %v64_v50 = vld [vmem:[%s883_s1 + $0x198] sm:$0xff] }
  0x15   :  { %v63_v48 = vld [vmem:[%s883_s1 + $0x190] sm:$0xff]  ;;  %v72_v58 = vld [vmem:[%s883_s1 + $0x1d8] sm:$0xff] }
  0x16   :  { %406 = vmatpush1.bf16.msra.mxu0 %v605_v43  ;;  %447 = vmatpush1.bf16.msra.mxu1 %v607_v44  ;;  %v60_v43 = vld [vmem:[%s883_s1 + $0x178] sm:$0xff]  ;;  %v609_v44 = vcombine.low %v47_v33, %v51_v34  ;;  %v67_v49 = vld [vmem:[%s883_s1 + $0x1b0] sm:$0xff] }
  0x17   :  { %407 = vmatprep.subr.bf16.mxu0 %v614_v45  ;;  %448 = vmatprep.subr.bf16.mxu1 %v616_v46  ;;  %v618_v46 = vcombine.high %v55_v40, %v59_v41  ;;  %v620_v47 = vcombine.high %v56_v42, %v60_v43  ;;  %v71_v56 = vld [vmem:[%s883_s1 + $0x1d0] sm:$0xff] }
  0x18   :  { %v75_v57 = vld [vmem:[%s883_s1 + $0x1f0] sm:$0xff] }
  0x19   :  { %v633_v0 = vcombine.low %v71_v56, %v75_v57 }
  0x1a   :  { %408 = vmatpush1.bf16.msra.mxu0 %v613_v51  ;;  %449 = vmatpush1.bf16.msra.mxu1 %v615_v52  ;;  %v68_v51 = vld [vmem:[%s883_s1 + $0x1b8] sm:$0xff]  ;;  %v617_v52 = vcombine.low %v55_v40, %v59_v41 }
  0x1b   :  { %409 = vmatprep.subr.bf16.mxu0 %v622_v53  ;;  %450 = vmatprep.subr.bf16.mxu1 %v624_v54  ;;  %v619_v53 = vcombine.low %v56_v42, %v60_v43  ;;  %v626_v54 = vcombine.high %v63_v48, %v67_v49  ;;  %v628_v55 = vcombine.high %v64_v50, %v68_v51 }
  0x1e   :  { %410 = vmatpush1.bf16.msra.mxu0 %v621_v59  ;;  %451 = vmatpush1.bf16.msra.mxu1 %v623_v60  ;;  %v76_v59 = vld [vmem:[%s883_s1 + $0x1f8] sm:$0xff]  ;;  %v625_v60 = vcombine.low %v63_v48, %v67_v49 }
  0x1f   :  { %411 = vmatprep.subr.bf16.mxu0 %v630_v61  ;;  %452 = vmatprep.subr.bf16.mxu1 %v632_v62  ;;  %v627_v61 = vcombine.low %v64_v50, %v68_v51  ;;  %v634_v62 = vcombine.high %v71_v56, %v75_v57  ;;  %v636_v63 = vcombine.high %v72_v58, %v76_v59 }
  0x20   :  { %v635_v1 = vcombine.low %v72_v58, %v76_v59 }
  0x22   :  { %412 = vmatpush1.bf16.msra.mxu0 %v629_v4  ;;  %453 = vmatpush1.bf16.msra.mxu1 %v631_v5 }
  0x23   :  { %479 = vmatprep.subr.bf16.mxu0 %v578_v6  ;;  %520 = vmatprep.subr.bf16.mxu1 %v580_v7 }
  0x25   :  { %430 = vmatmul.mubr.bf16.vlgmr.msra.gmra.mrb[0].mxu0 %v779_v12  ;;  %471 = vmatmul.mubr.bf16.vlgmr.msra.gmra.mrb[0].mxu1 %v779_v12 }
  0x26   :  { %480 = vmatpush1.bf16.msra.mxu0 %v577_v13  ;;  %521 = vmatpush1.bf16.msra.mxu1 %v579_v14 }
  0x27   :  { %481 = vmatprep.subr.bf16.mxu0 %v586_v15  ;;  %522 = vmatprep.subr.bf16.mxu1 %v588_v16 }
  0x28   :  { %511 = vmatprep.mubr.bf16.mxu0 %v638_v3  ;;  %552 = vmatprep.mubr.bf16.mxu1 %v638_v3  ;;  %v48_v3 = vld [vmem:[%s883_s1 + $0x118] sm:$0xff] }
  0x29   :  { %v612_v39 = vcombine.high %v48_v3, %v52_v35  ;;  %v611_v45 = vcombine.low %v48_v3, %v52_v35 }
  0x2a   :  { %482 = vmatpush1.bf16.msra.mxu0 %v585_v21  ;;  %523 = vmatpush1.bf16.msra.mxu1 %v587_v22 }
  0x2b   :  { %483 = vmatprep.subr.bf16.mxu0 %v594_v23  ;;  %524 = vmatprep.subr.bf16.mxu1 %v596_v24 }
  0x2e   :  { %484 = vmatpush1.bf16.msra.mxu0 %v593_v29  ;;  %525 = vmatpush1.bf16.msra.mxu1 %v595_v30 }
  0x2f   :  { %485 = vmatprep.subr.bf16.mxu0 %v602_v31  ;;  %526 = vmatprep.subr.bf16.mxu1 %v604_v32 }
  0x32   :  { %486 = vmatpush1.bf16.msra.mxu0 %v601_v36  ;;  %527 = vmatpush1.bf16.msra.mxu1 %v603_v37 }
  0x33   :  { %487 = vmatprep.subr.bf16.mxu0 %v610_v38  ;;  %528 = vmatprep.subr.bf16.mxu1 %v612_v39 }
  0x36   :  { %488 = vmatpush1.bf16.msra.mxu0 %v609_v44  ;;  %529 = vmatpush1.bf16.msra.mxu1 %v611_v45 }
  0x37   :  { %489 = vmatprep.subr.bf16.mxu0 %v618_v46  ;;  %530 = vmatprep.subr.bf16.mxu1 %v620_v47 }
  0x3a   :  { %490 = vmatpush1.bf16.msra.mxu0 %v617_v52  ;;  %531 = vmatpush1.bf16.msra.mxu1 %v619_v53 }
  0x3b   :  { %491 = vmatprep.subr.bf16.mxu0 %v626_v54  ;;  %532 = vmatprep.subr.bf16.mxu1 %v628_v55 }
  0x3e   :  { %492 = vmatpush1.bf16.msra.mxu0 %v625_v60  ;;  %533 = vmatpush1.bf16.msra.mxu1 %v627_v61 }
  0x3f   :  { %493 = vmatprep.subr.bf16.mxu0 %v634_v62  ;;  %534 = vmatprep.subr.bf16.mxu1 %v636_v63 }
  0x42   :  { %494 = vmatpush1.bf16.msra.mxu0 %v633_v0  ;;  %535 = vmatpush1.bf16.msra.mxu1 %v635_v1 }
  0x45   :  { %512 = vmatmul.mubr.bf16.vlgmr.msra.gmra.mrb[4].mxu0 %v779_v12  ;;  %553 = vmatmul.mubr.bf16.vlgmr.msra.gmra.mrb[4].mxu1 %v779_v12 }
  0xf8   :  { %v431_v2 = vpop.f32.mrb[0].mxu0  ;;  %v472_v4 = vpop.f32.mrb[0].mxu1 }
  0xf9   :  { %561 = vst [vmem:[%s885_s2] sm:$0xff] %v431_v2  ;;  %v433_v5 = vpop.f32.mrb[1].mxu0  ;;  %563 = vst [vmem:[%s885_s2 + $0x10] sm:$0xff] %v472_v4  ;;  %v474_v6 = vpop.f32.mrb[1].mxu1 }
  0xfa   :  { %562 = vst [vmem:[%s885_s2 + $0x8] sm:$0xff] %v433_v5  ;;  %v435_v7 = vpop.f32.mrb[2].mxu0  ;;  %564 = vst [vmem:[%s885_s2 + $0x18] sm:$0xff] %v474_v6  ;;  %v476_v8 = vpop.f32.mrb[2].mxu1 }
  0xfb   :  { %v436_v9 = vpop.f32.mrb[3].mxu0  ;;  %v477_v10 = vpop.f32.mrb[3].mxu1 }
 0x118   :  { %v513_v11 = vpop.f32.mrb[4].mxu0  ;;  %v554_v12 = vpop.f32.mrb[4].mxu1 }
 0x119   :  { %565 = vst [vmem:[%s885_s2 + $0x20] sm:$0xff] %v513_v11  ;;  %v515_v13 = vpop.f32.mrb[5].mxu0  ;;  %567 = vst [vmem:[%s885_s2 + $0x30] sm:$0xff] %v554_v12  ;;  %v556_v14 = vpop.f32.mrb[5].mxu1 }
 0x11a   :  { %566 = vst [vmem:[%s885_s2 + $0x28] sm:$0xff] %v515_v13  ;;  %v517_v15 = vpop.f32.mrb[6].mxu0  ;;  %568 = vst [vmem:[%s885_s2 + $0x38] sm:$0xff] %v556_v14  ;;  %v558_v16 = vpop.f32.mrb[6].mxu1 }
 0x11b   :  { %v518_v17 = vpop.f32.mrb[7].mxu0  ;;  %v559_v18 = vpop.f32.mrb[7].mxu1 }

</bundles_post_ra>
